<compile_context>
chip_gen: v6e
topology: v6e:2x2x1
jax: 0.10.0
libtpu: 0.0.40
codegen_flags: <defaults>
</compile_context>

<pallas_src>
import jax
import jax.numpy as jnp
from jax import lax
from jax.experimental import pallas as pl
from jax.experimental.pallas import tpu as pltpu

LANE = 128  # TPU lane width; batch tiles (when tiled) are multiples of this.


def mlp_kernel(x_ref, w1_ref, b1_ref, w2t_ref, b2_ref, o_ref):
    # Layer 1: (tile_b, in) @ (in, hid) -> (tile_b, hid), f32 MXU accumulation.
    h = jnp.dot(x_ref[...], w1_ref[...], preferred_element_type=jnp.float32)
    h = jnp.maximum(h + b1_ref[...], 0.0)  # bias + ReLU on the VPU (f32)

    # Layer 2, transposed so the tiny out_dim sits on the sublane axis and the
    # batch is lane-dense: (out, hid) . (tile_b, hid) contracted over hid
    #   -> (out, tile_b) == logits^T for this tile (same pattern as q @ k^T).
    o = lax.dot_general(
        w2t_ref[...], h.astype(w2t_ref.dtype),
        dimension_numbers=(((1,), (1,)), ((), ())),
        preferred_element_type=jnp.float32)
    o_ref[...] = (o + b2_ref[...]).astype(o_ref.dtype)


def _round_up(n, m):
    return ((n + m - 1) // m) * m


def _choose_tile_b(batch):
    """Pick the largest batch tile that still yields >= 4 grid steps.

    Per-grid-step overhead is ~0.35 us, so big tiles are needed to stay near
    the HBM roofline; >= 4 steps keeps >= 2 steps per v7x TensorCore so the
    i+1 prefetch can hide the x/out DMAs.  VMEM at the 8192-row ceiling:
    2 MiB f32 x-tile (x2 buffers) + 4 MiB f32 hidden activations + resident
    weights -- comfortably under the scoped VMEM defaults on v5e/v6e/v7x at
    these feature sizes.
    """
    for t in (8192, 4096, 2048, 1024, 512, 256, 128):
        if batch >= 4 * t:
            return t
    if batch > 2 * LANE:
        return LANE
    return batch  # single block covering the whole (possibly ragged) batch


def prepare_params(w1_pt, b1_pt, w2_pt, b2_pt):
    """One-time conversion from PyTorch nn.Linear layout ((out, in) / (out,))
    to the kernel layout.  Call at parameter-setup time, NOT per forward."""
    w1 = jnp.asarray(w1_pt).T                 # (in, hid)   for x @ w1
    b1 = jnp.asarray(b1_pt).reshape(1, -1)    # (1, hid)
    w2t = jnp.asarray(w2_pt)                  # (out, hid)  already transposed layout
    b2 = jnp.asarray(b2_pt).reshape(-1, 1)    # (out, 1)
    return w1, b1, w2t, b2


def code_clone_detector_forward(x, w1, b1, w2t, b2, *, tile_b=None,
                                compute_dtype=None):
    """logits = relu(x @ w1 + b1) @ w2t.T + b2, returned as (B, out_dim).

    x: (B, 2*D); w1: (2*D, 4*D); b1: (1, 4*D); w2t: (out, 4*D); b2: (out, 1).
    compute_dtype=jnp.bfloat16 streams x / weights in bf16 (f32 accumulation).
    """
    B, in_dim = x.shape
    hid_dim = w1.shape[1]
    out_dim = w2t.shape[0]
    out_dtype = x.dtype

    if compute_dtype is not None:
        # Cast the streamed / MXU operands; biases stay f32 (tiny, resident,
        # added after f32 accumulation).
        x = x.astype(compute_dtype)
        w1 = w1.astype(compute_dtype)
        w2t = w2t.astype(compute_dtype)

    if tile_b is None:
        tile_b = _choose_tile_b(B)
    if tile_b >= B:
        tile_b = B                       # single block == full array (no alignment needed)
    else:
        tile_b = _round_up(tile_b, LANE)  # lane-aligned for the transposed output block
        if tile_b >= B:
            tile_b = B

    grid = (pl.cdiv(B, tile_b),)          # ragged final block: no jnp.pad of x

    bytes_accessed = int(
        B * in_dim * x.dtype.itemsize          # stream x (dominant)
        + in_dim * hid_dim * w1.dtype.itemsize  # W1 (resident)
        + hid_dim * b1.dtype.itemsize           # b1
        + out_dim * hid_dim * w2t.dtype.itemsize  # W2^T (resident)
        + out_dim * b2.dtype.itemsize           # b2
        + B * out_dim * jnp.dtype(out_dtype).itemsize)  # compact logits
    flops = int(2 * B * hid_dim * (in_dim + out_dim))

    out_t = pl.pallas_call(
        mlp_kernel,
        out_shape=jax.ShapeDtypeStruct((out_dim, B), out_dtype),
        grid_spec=pltpu.PrefetchScalarGridSpec(
            num_scalar_prefetch=0,
            grid=grid,
            in_specs=[
                pl.BlockSpec((tile_b, in_dim), lambda i: (i, 0)),    # x tile
                pl.BlockSpec((in_dim, hid_dim), lambda i: (0, 0)),   # W1 (full, resident)
                pl.BlockSpec((1, hid_dim), lambda i: (0, 0)),        # b1
                pl.BlockSpec((out_dim, hid_dim), lambda i: (0, 0)),  # W2^T (full, resident)
                pl.BlockSpec((out_dim, 1), lambda i: (0, 0)),        # b2
            ],
            out_specs=pl.BlockSpec((out_dim, tile_b), lambda i: (0, i)),
        ),
        compiler_params=pltpu.CompilerParams(
            dimension_semantics=("parallel",)),
        cost_estimate=pl.CostEstimate(
            flops=flops, transcendentals=0, bytes_accessed=bytes_accessed),
    )(x, w1, b1, w2t, b2)

    # Tiny (out_dim, B) -> (B, out_dim) transpose to match the PyTorch module.
    return out_t.T


if __name__ == "__main__":
    # Small shapes consistent with the module: input_dim D -> x has 2*D features.
    D = 32
    in_dim, hid_dim, out_dim = 2 * D, 4 * D, 2   # 64, 128, 2

    key = jax.random.PRNGKey(0)
    kx, k1, k2, k3, k4 = jax.random.split(key, 5)

    # Parameters in PyTorch nn.Linear layout: weight (out, in), bias (out,).
    w1_pt = jax.random.normal(k1, (hid_dim, in_dim), jnp.float32) / jnp.sqrt(in_dim)
    b1_pt = jax.random.normal(k2, (hid_dim,), jnp.float32) * 0.01
    w2_pt = jax.random.normal(k3, (out_dim, hid_dim), jnp.float32) / jnp.sqrt(hid_dim)
    b2_pt = jax.random.normal(k4, (out_dim,), jnp.float32) * 0.01

    # One-time layout prep, hoisted out of the forward path.
    w1, b1, w2t, b2 = prepare_params(w1_pt, b1_pt, w2_pt, b2_pt)

    def ref_fn(xv):
        with jax.default_matmul_precision("highest"):
            return jnp.maximum(xv @ w1_pt.T + b1_pt, 0.0) @ w2_pt.T + b2_pt

    # B=16: single-block path.  B=300: ragged final block (no wrapper-side pad).
    # B=512: 4-step tiled path (>= 2 grid steps per v7x TensorCore).
    for B in (16, 300, 512):
        x = jax.random.normal(kx, (B, in_dim), jnp.float32)
        logits = jax.block_until_ready(
            code_clone_detector_forward(x, w1, b1, w2t, b2))
        assert logits.shape == (B, out_dim)
        assert jnp.allclose(logits, ref_fn(x), atol=1e-5, rtol=1e-5), f"B={B}"

    # bf16 streaming path: halves x/W HBM traffic, f32 MXU accumulation.
    x = jax.random.normal(kx, (512, in_dim), jnp.float32)
    logits_bf16 = jax.block_until_ready(
        code_clone_detector_forward(x, w1, b1, w2t, b2,
                                    compute_dtype=jnp.bfloat16))
    assert logits_bf16.shape == (512, out_dim)
    assert jnp.allclose(logits_bf16, ref_fn(x), atol=5e-2, rtol=5e-2)

    print("KERNEL_OK")
</pallas_src>

<mosaic_0001>
module attributes {stable_mosaic.version = 11 : i64} {
  func.func @mlp_kernel(%arg0: i32, %arg1: memref<16x64xf32, #tpu.memory_space<vmem>>, %arg2: memref<64x128xf32, #tpu.memory_space<vmem>>, %arg3: memref<1x128xf32, #tpu.memory_space<vmem>>, %arg4: memref<2x128xf32, #tpu.memory_space<vmem>>, %arg5: memref<2x1xf32, #tpu.memory_space<vmem>>, %arg6: memref<2x16xf32, #tpu.memory_space<vmem>>) attributes {dimension_semantics = [#tpu.dimension_semantics<parallel>], iteration_bounds = array<i64: 1>, scalar_prefetch = 0 : i64, scratch_operands = 0 : i64, tpu.core_type = #tpu.core_type<tc>, window_params = [{transform_indices = @transform_0, window_bounds = array<i64: 16, 64>}, {pipeline_mode = #tpu.pipeline_mode<synchronous>, transform_indices = @transform_1, window_bounds = array<i64: 64, 128>}, {pipeline_mode = #tpu.pipeline_mode<synchronous>, transform_indices = @transform_2, window_bounds = array<i64: 1, 128>}, {pipeline_mode = #tpu.pipeline_mode<synchronous>, transform_indices = @transform_3, window_bounds = array<i64: 2, 128>}, {pipeline_mode = #tpu.pipeline_mode<synchronous>, transform_indices = @transform_4, window_bounds = array<i64: 2, 1>}, {transform_indices = @transform_5, window_bounds = array<i64: 2, 16>}]} {
    %c0 = arith.constant 0 : index
    %c0_0 = arith.constant 0 : index
    %0 = vector.load %arg1[%c0, %c0_0] : memref<16x64xf32, #tpu.memory_space<vmem>>, vector<16x64xf32>
    %c0_1 = arith.constant 0 : index
    %c0_2 = arith.constant 0 : index
    %1 = vector.load %arg2[%c0_1, %c0_2] : memref<64x128xf32, #tpu.memory_space<vmem>>, vector<64x128xf32>
    %cst = arith.constant dense<0.000000e+00> : vector<16x128xf32>
    %2 = tpu.matmul %0, %1, %cst {dimension_numbers = #tpu.dot_dimension_numbers<[1], [0], [0], [1], [0, 0, 1, 1], [], []>} : vector<16x64xf32>, vector<64x128xf32>, vector<16x128xf32> -> vector<16x128xf32>
    %c0_3 = arith.constant 0 : index
    %c0_4 = arith.constant 0 : index
    %3 = vector.load %arg3[%c0_3, %c0_4] : memref<1x128xf32, #tpu.memory_space<vmem>>, vector<1x128xf32>
    %4 = vector.broadcast %3 : vector<1x128xf32> to vector<16x128xf32>
    %5 = arith.addf %2, %4 : vector<16x128xf32>
    %cst_5 = arith.constant 0.000000e+00 : f32
    %6 = vector.broadcast %cst_5 : f32 to vector<16x128xf32>
    %7 = arith.maximumf %5, %6 : vector<16x128xf32>
    %c0_6 = arith.constant 0 : index
    %c0_7 = arith.constant 0 : index
    %8 = vector.load %arg4[%c0_6, %c0_7] : memref<2x128xf32, #tpu.memory_space<vmem>>, vector<2x128xf32>
    %cst_8 = arith.constant dense<0.000000e+00> : vector<2x16xf32>
    %9 = tpu.matmul %8, %7, %cst_8 {dimension_numbers = #tpu.dot_dimension_numbers<[1], [1], [0], [0], [0, 0, 1, 0], [], []>} : vector<2x128xf32>, vector<16x128xf32>, vector<2x16xf32> -> vector<2x16xf32>
    %c0_9 = arith.constant 0 : index
    %c0_10 = arith.constant 0 : index
    %10 = vector.load %arg5[%c0_9, %c0_10] : memref<2x1xf32, #tpu.memory_space<vmem>>, vector<2x1xf32>
    %11 = vector.broadcast %10 : vector<2x1xf32> to vector<2x16xf32>
    %12 = arith.addf %9, %11 : vector<2x16xf32>
    %c0_11 = arith.constant 0 : index
    %c0_12 = arith.constant 0 : index
    %13 = vector.load %arg6[%c0_11, %c0_12] : memref<2x16xf32, #tpu.memory_space<vmem>>, vector<2x16xf32>
    tpu.vector_store %arg6[%c0_11, %c0_12], %12 {strides = array<i32>} : memref<2x16xf32, #tpu.memory_space<vmem>>, vector<2x16xf32>,
    return
  }
  func.func @transform_0(%arg0: i32) -> (i32, i32) {
    %c0_i32 = arith.constant 0 : i32
    %c0_i32_0 = arith.constant 0 : i32
    return %arg0, %c0_i32 : i32, i32
  }
  func.func @transform_1(%arg0: i32) -> (i32, i32) {
    %c0_i32 = arith.constant 0 : i32
    %c0_i32_0 = arith.constant 0 : i32
    %c0_i32_1 = arith.constant 0 : i32
    return %c0_i32, %c0_i32_0 : i32, i32
  }
  func.func @transform_2(%arg0: i32) -> (i32, i32) {
    %c0_i32 = arith.constant 0 : i32
    %c0_i32_0 = arith.constant 0 : i32
    %c0_i32_1 = arith.constant 0 : i32
    return %c0_i32, %c0_i32_0 : i32, i32
  }
  func.func @transform_3(%arg0: i32) -> (i32, i32) {
    %c0_i32 = arith.constant 0 : i32
    %c0_i32_0 = arith.constant 0 : i32
    %c0_i32_1 = arith.constant 0 : i32
    return %c0_i32, %c0_i32_0 : i32, i32
  }
  func.func @transform_4(%arg0: i32) -> (i32, i32) {
    %c0_i32 = arith.constant 0 : i32
    %c0_i32_0 = arith.constant 0 : i32
    %c0_i32_1 = arith.constant 0 : i32
    return %c0_i32, %c0_i32_0 : i32, i32
  }
  func.func @transform_5(%arg0: i32) -> (i32, i32) {
    %c0_i32 = arith.constant 0 : i32
    %c0_i32_0 = arith.constant 0 : i32
    return %c0_i32, %arg0 : i32, i32
  }
}

</mosaic_0001>

<bundles_post_ra>
// kernel: tpu_custom_call.1
= control target key start
LH: loop header
LB: loop body
LE: loop exit
PB: predicated region body
PF: predicated region fallthrough
CT: control target
= control target key end

     0   :  { %10 = vsyncpa [#allocation3], 0  ;;  %s420_s0 = inlined_call_operand.hbm [shape: f32[16,64], index: 0, kind: input, shape index: {}]   ;;  %s421_s1 = inlined_call_operand.hbm [shape: f32[64,128], index: 1, kind: input, shape index: {}]   ;;  %s422_s2 = inlined_call_operand.vmem [shape: f32[1,128], index: 2, kind: input, shape index: {}]   ;;  %s423_s3 = inlined_call_operand.vmem [shape: f32[2,128], index: 3, kind: input, shape index: {}]   ;;  %s424_s4 = inlined_call_operand.vmem [shape: f32[2,1], index: 4, kind: input, shape index: {}]   ;;  %s425_s5 = inlined_call_operand.hbm [shape: f32[2,16], index: 5, kind: output, shape index: {}]  }
   0x1   :  { %11 = vsyncpa [#allocation6], 0 }
   0x2   :  { %12 = vsyncpa [#allocation4], 0  ;;  %s362_s18 = smov [#allocation2]  }
   0x3   :  { %s18_s19 = sshll.u32 %s362_s18, 4  ;;  %s19_s19 = int_to_ptr.vmem [resolvable:$true] %s18_s19 }
   0x4   :  { %s304_s20 = scalar_lea.vmem %s19_s19, 256  ;;  %p309_p1 = scmp.lt.s32.totalorder %s19_s19, %s19_s19 }
   0x5   :  { %p305_p0 = scmp.ne.s32.totalorder %s19_s19, %s304_s20  ;;  %p310_p2 = scmp.lt.s32.totalorder %s304_s20, %s304_s20 }
   0x7   :  { %p311_p3 = por %p310_p2, %p309_p1 }
   0x9   :  { %p312_p4 = pnand %p311_p3, %p305_p0 }
   0xb   :  { %315 = shalt.err (!%p312_p4)
}
   0xc   :  { %s363_s21 = smov 128   ;;  %s364_s22 = smov 8  }
   0xd   :  { %24 = dma.hbm_to_vmem [thread:$0]  %s420_s0, 256, %s19_s19, [#allocation3], %s363_s21, %s363_s21, %s364_s22  }
   0xe   :  { %s365_s25 = smov [#allocation5]  }
   0xf   :  { %s30_s26 = sshll.u32 %s365_s25, 4  ;;  %s31_s26 = int_to_ptr.vmem [resolvable:$true] %s30_s26 }
  0x10   :  { %s324_s27 = scalar_lea.vmem %s31_s26, 1024  ;;  %p329_p6 = scmp.lt.s32.totalorder %s31_s26, %s31_s26 }
  0x11   :  { %p325_p5 = scmp.ne.s32.totalorder %s31_s26, %s324_s27  ;;  %p330_p7 = scmp.lt.s32.totalorder %s324_s27, %s324_s27 }
  0x13   :  { %p331_p8 = por %p330_p7, %p329_p6 }
  0x15   :  { %p332_p9 = pnand %p331_p8, %p325_p5 }
  0x17   :  { %335 = shalt.err (!%p332_p9)
}
  0x18   :  { %36 = dma.hbm_to_vmem [thread:$0]  %s421_s1, 1024, %s31_s26, [#allocation6], %s363_s21, %s363_s21, %s364_s22  }
  0x19   :  { %356 = dma.done.wait [#allocation3], 256  }
  0x1a   :  { %357 = vsyncadd [#allocation3], 4294967040 }
  0x1b   :  { %358 = dma.done.wait [#allocation6], 1024  }
  0x1c   :  { %359 = vsyncadd [#allocation6], 4294966272  ;;  %v58_v0 = vld [vmem:[#allocation5 + $0x38] sm:$0xff]  ;;  %v57_v1 = vld [vmem:[#allocation5 + $0x30] sm:$0xff]  ;;  %vm66_vm0 = vcmask 523264   ;;  %v366_v10 = vmov 0.0  }
  0x1d   :  { %261 = vmatprep.subr.mxu0 %v58_v0  ;;  %v56_v2 = vld [vmem:[#allocation5 + $0x28] sm:$0xff]  ;;  %v49_v3 = vld [vmem:[#allocation2] sm:$0xff]  ;;  %v55_v4 = vld [vmem:[#allocation5 + $0x20] sm:$0xff]  ;;  %280 = vmatprep.subr.mxu1 %v366_v10  ;;  %vm367_vm1 = vmmov 0   ;;  %v368_v12 = vmov 0   ;;  %vm227_vm2 = vcmask 123904  }
  0x1e   :  { %262 = vmatpush3.msra.mxu0 %v58_v0  ;;  %277 = vmatprep.mubr.msk.f32.mxu0 %vm66_vm0, %v49_v3  ;;  %v54_v5 = vld [vmem:[#allocation5 + $0x18] sm:$0xff]  ;;  %v53_v6 = vld [vmem:[#allocation5 + $0x10] sm:$0xff]  ;;  %v52_v7 = vld [vmem:[#allocation5 + $0x8] sm:$0xff] }
  0x1f   :  { %263 = vmatprep.subr.mxu0 %v57_v1  ;;  %v51_v8 = vld [vmem:[#allocation5] sm:$0xff]  ;;  %v50_v9 = vld [vmem:[#allocation2 + $0x8] sm:$0xff]  ;;  %284 = vmatprep.mubr.msk.f32.mxu1 %vm367_vm1, %v366_v10  ;;  %v151_v11 = vld [vmem:[%s424_s4] sm:$0x3]  ;;  %s369_s4 = smov [#allocation7]  }
  0x20   :  { %264 = vmatpush3.msra.mxu0 %v57_v1  ;;  %295 = vset.pattern.permute.xlu0 %v368_v12  ;;  %v245_v13 = vld [vmem:[%s422_s2] ss:$0 sm:$0xff]  ;;  %s235_s9 = sshll.u32 %s369_s4, 4  ;;  %s236_s9 = int_to_ptr.vmem [resolvable:$true] %s235_s9 }
  0x21   :  { %265 = vmatprep.subr.mxu0 %v56_v2  ;;  %154 = vperm.xlu0 %295, %v151_v11   ;;  %v150_v20 = vld [vmem:[%s423_s3] sm:$0x3]  ;;  %s336_s2 = scalar_lea.vmem %s236_s9, 32  ;;  %p341_p11 = scmp.lt.s32.totalorder %s236_s9, %s236_s9 }
  0x22   :  { %266 = vmatpush3.msra.mxu0 %v56_v2  ;;  %p337_p10 = scmp.ne.s32.totalorder %s236_s9, %s336_s2  ;;  %p342_p12 = scmp.lt.s32.totalorder %s336_s2, %s336_s2 }
  0x23   :  { %267 = vmatprep.subr.mxu0 %v55_v4 }
  0x24   :  { %268 = vmatpush3.msra.mxu0 %v55_v4  ;;  %p343_p13 = por %p342_p12, %p341_p11 }
  0x25   :  { %269 = vmatprep.subr.mxu0 %v54_v5 }
  0x26   :  { %270 = vmatpush3.msra.mxu0 %v54_v5  ;;  %p344_p0 = pnand %p343_p13, %p337_p10 }
  0x27   :  { %271 = vmatprep.subr.mxu0 %v53_v6 }
  0x28   :  { %272 = vmatpush3.msra.mxu0 %v53_v6 }
  0x29   :  { %273 = vmatprep.subr.mxu0 %v52_v7 }
  0x2a   :  { %274 = vmatpush3.msra.mxu0 %v52_v7 }
  0x2b   :  { %275 = vmatprep.subr.mxu0 %v51_v8 }
  0x2c   :  { %276 = vmatpush3.msra.mxu0 %v51_v8 }
  0x2d   :  { %278 = vmatmul.mubr.msk.f32.vlgmr.msra.gmra.mxu0 %vm66_vm0, %v50_v9 }
  0x9c   :  { %v155_v21 = vpop.permute.xlu0 %154 }
  0xed   :  { %v279_v14 = vpop.f32.mrf.mxu0 }
  0xee   :  { %v145_v15 = vadd.f32 %v279_v14, %v245_v13 }
  0xef   :  { %v139_v16 = vpop.f32.mrf.mxu0 }
  0xf0   :  { %v149_v17 = vmax.f32 %v145_v15, 0.0  ;;  %v140_v18 = vadd.f32 %v245_v13, %v139_v16 }
  0xf2   :  { %281 = vmatpush3.xpose.msra.mxu1 %v149_v17  ;;  %v148_v19 = vmax.f32 %v140_v18, 0.0 }
  0xf3   :  { %282 = vmatprep.subr.mxu1 %v366_v10 }
  0xf6   :  { %283 = vmatpush3.xpose.msra.mxu1 %v148_v19 }
  0xf9   :  { %285 = vmatmul.mubr.f32.vlgmr.msra.gmra.mxu1 %v150_v20 }
 0x1b9   :  { %v223_v22 = vpop.f32.mrf.mxu1 }
 0x1ba   :  { %v224_v23 = vadd.f32 %v223_v22, %v155_v21 }
 0x1bb   :  { %v286_v24 = vpop.f32.mrf.mxu1 }
 0x1bc   :  { %228 = vst.msk [vmem:[#allocation7] sm:$0x3] %vm227_vm2, %v224_v23 }
 0x1bd   :  { %347 = shalt.err (!%p344_p0)
}
 0x1be   :  { %238 = dma.vmem_to_hbm [thread:$0]  %s236_s9, 32, %s425_s5, [#allocation4]  }
 0x1bf   :  { %360 = dma.done.wait [#allocation4], 32  }
 0x1c0   :  { %361 = vsyncadd [#allocation4], 4294967264 }
 0x1c1   :  { %242 = vsyncpa [#allocation3], 1 }
 0x1c2   :  { %243 = vsyncpa [#allocation6], 1 }
 0x1c3   :  { %244 = vsyncpa [#allocation4], 1 }

</bundles_post_ra>
